<compile_context>
chip_gen: v6e
topology: v6e:2x2x1
jax: 0.10.0
libtpu: 0.0.40
codegen_flags: <defaults>
</compile_context>

<pallas_src>
import functools

import jax
import jax.numpy as jnp
from jax.experimental import pallas as pl
from jax.experimental.pallas import tpu as pltpu

_LANE_BLOCK = 128  # batch tile = one full lane width


def _layer_dims(in_shape, enc_dim):
    # (out_features, in_features) per nn.Linear, in execution order.
    return (
        (4, in_shape),    # encoder_head.0
        (4, 4),           # encoder_head.2
        (4, 4),           # encoder_head.4
        (enc_dim, 4),     # encoder_sigma
        (enc_dim, 4),     # encoder_mean
        (4, enc_dim),     # decoder.0
        (4, 4),           # decoder.2
        (4, 4),           # decoder.4
        (in_shape, 4),    # decoder.6
    )


def _vae_kernel(w_ref, b_ref, x_ref, noise_ref, out_ref, *, in_shape, enc_dim):
    dims = _layer_dims(in_shape, enc_dim)
    P = w_ref.shape[1]          # padded feature dim (zero-padded rows/cols)
    B = x_ref.shape[1]          # 128-lane batch block

    def dense(i, h):
        # VPU MAC:  out[P, B] = W_i @ h + b_i, unrolled over K (K <= 16).
        # Padded rows of W_i / b_i are zero, so rows >= out_i are exactly 0
        # and padded rows of `h` are never read (loop only runs to true K).
        k_dim = dims[i][1]
        W = w_ref[i]            # [P, P]  (PyTorch [out, in] layout, zero-padded)
        bias = b_ref[i]         # [P, 1]
        acc = W[:, 0:1] * h[0:1, :]
        for k in range(1, k_dim):
            acc = acc + W[:, k:k + 1] * h[k:k + 1, :]
        return acc + bias

    x = x_ref[...]                                        # [in_shape, B]

    # --- encoder head: Linear -> ReLU -> Linear -> ReLU -> Linear ---
    h = jnp.maximum(dense(0, x), 0.0)
    h = jnp.maximum(dense(1, h), 0.0)
    h = dense(2, h)

    # --- variational heads + reparameterized sample ---
    sigma = jax.nn.sigmoid(dense(3, h))
    mean = jax.nn.sigmoid(dense(4, h))
    z = mean[:enc_dim, :] + sigma[:enc_dim, :] * noise_ref[...]   # [enc, B]

    # --- decoder: (Linear -> ReLU) x3 -> Linear ---
    d = jnp.maximum(dense(5, z), 0.0)
    d = jnp.maximum(dense(6, d), 0.0)
    d = jnp.maximum(dense(7, d), 0.0)
    out = dense(8, d)

    out_ref[...] = out[:in_shape, :].astype(out_ref.dtype)


@jax.jit
def vae_forward(x, noise, w_slab, b_slab):
    """x: [B, in_shape] f32; noise: [B, enc_dim] f32 (reparameterization noise).

    Returns decoded_x: [B, in_shape] f32.
    """
    batch, in_shape = x.shape
    enc_dim = noise.shape[1]
    P = w_slab.shape[1]

    # Feature-major layout: batch rides the 128-lane axis (lane-dense stores).
    b_pad = pl.cdiv(batch, _LANE_BLOCK) * _LANE_BLOCK
    xt = jnp.pad(x.astype(jnp.float32).T, ((0, 0), (0, b_pad - batch)))
    nt = jnp.pad(noise.astype(jnp.float32).T, ((0, 0), (0, b_pad - batch)))

    kernel = functools.partial(_vae_kernel, in_shape=in_shape, enc_dim=enc_dim)

    out_t = pl.pallas_call(
        kernel,
        out_shape=jax.ShapeDtypeStruct((in_shape, b_pad), jnp.float32),
        grid_spec=pltpu.PrefetchScalarGridSpec(
            num_scalar_prefetch=0,
            grid=(b_pad // _LANE_BLOCK,),
            in_specs=[
                # Packed params: constant block index -> copied once, stays
                # VMEM-resident across all batch grid steps.
                pl.BlockSpec((9, P, P), lambda b: (0, 0, 0)),
                pl.BlockSpec((9, P, 1), lambda b: (0, 0, 0)),
                # Activations: one 128-lane batch slab per grid step.
                pl.BlockSpec((in_shape, _LANE_BLOCK), lambda b: (0, b)),
                pl.BlockSpec((enc_dim, _LANE_BLOCK), lambda b: (0, b)),
            ],
            out_specs=pl.BlockSpec((in_shape, _LANE_BLOCK), lambda b: (0, b)),
        ),
        compiler_params=pltpu.CompilerParams(
            dimension_semantics=("parallel",)),
    )(w_slab, b_slab, xt, nt)

    return out_t[:, :batch].T


def make_params(key, in_shape, encoded_space_dim):
    """PyTorch nn.Linear-style init (U(-1/sqrt(fan_in), +)), packed into two
    zero-padded slabs:
        w_slab[i, :out_i, :in_i] = W_i   (torch [out, in] layout)
        b_slab[i, :out_i, 0]     = b_i
    """
    dims = _layer_dims(in_shape, encoded_space_dim)
    max_dim = max(max(o, i) for o, i in dims)
    P = max(8, -(-max_dim // 8) * 8)            # pad to a sublane multiple
    w_slab = jnp.zeros((len(dims), P, P), jnp.float32)
    b_slab = jnp.zeros((len(dims), P, 1), jnp.float32)
    keys = jax.random.split(key, len(dims))
    for idx, (k, (fo, fi)) in enumerate(zip(keys, dims)):
        kw, kb = jax.random.split(k)
        bound = 1.0 / float(fi) ** 0.5
        w = jax.random.uniform(kw, (fo, fi), jnp.float32, -bound, bound)
        b = jax.random.uniform(kb, (fo,), jnp.float32, -bound, bound)
        w_slab = w_slab.at[idx, :fo, :fi].set(w)
        b_slab = b_slab.at[idx, :fo, 0].set(b)
    return w_slab, b_slab


def _reference_forward(x, noise, w_slab, b_slab):
    """Pure-JAX reference with identical semantics (batch-major)."""
    in_shape = x.shape[1]
    enc_dim = noise.shape[1]
    dims = _layer_dims(in_shape, enc_dim)

    def lin(h, i):
        fo, fi = dims[i]
        return h @ w_slab[i, :fo, :fi].T + b_slab[i, :fo, 0]

    h = jnp.maximum(lin(x, 0), 0.0)
    h = jnp.maximum(lin(h, 1), 0.0)
    h = lin(h, 2)
    sigma = jax.nn.sigmoid(lin(h, 3))
    mean = jax.nn.sigmoid(lin(h, 4))
    z = mean + sigma * noise
    d = jnp.maximum(lin(z, 5), 0.0)
    d = jnp.maximum(lin(d, 6), 0.0)
    d = jnp.maximum(lin(d, 7), 0.0)
    return lin(d, 8)


if __name__ == "__main__":
    batch = 256                 # multiple of 128 -> two lane-dense grid steps
    in_shape = 16
    encoded_space_dim = 4

    root = jax.random.PRNGKey(0)
    k_x, k_noise, k_params = jax.random.split(root, 3)

    x = jax.random.normal(k_x, (batch, in_shape), jnp.float32)
    # Reparameterization noise ~ N(0, 1), sampled deterministically outside the
    # kernel (matches torch.distributions.Normal(0, 1).sample(mean.shape)).
    noise = jax.random.normal(k_noise, (batch, encoded_space_dim), jnp.float32)

    w_slab, b_slab = make_params(k_params, in_shape, encoded_space_dim)

    out = jax.block_until_ready(vae_forward(x, noise, w_slab, b_slab))

    ref = _reference_forward(x, noise, w_slab, b_slab)
    assert out.shape == (batch, in_shape)
    assert jnp.allclose(out, ref, atol=1e-5, rtol=1e-5), float(
        jnp.max(jnp.abs(out - ref)))

    print("KERNEL_OK")
</pallas_src>

<mosaic_0001>
module attributes {stable_mosaic.version = 11 : i64} {
  func.func @_vae_kernel(%arg0: i32, %arg1: memref<9x16x16xf32, #tpu.memory_space<vmem>>, %arg2: memref<9x16x1xf32, #tpu.memory_space<vmem>>, %arg3: memref<16x128xf32, #tpu.memory_space<vmem>>, %arg4: memref<4x128xf32, #tpu.memory_space<vmem>>, %arg5: memref<16x128xf32, #tpu.memory_space<vmem>>) attributes {dimension_semantics = [#tpu.dimension_semantics<parallel>], iteration_bounds = array<i64: 2>, scalar_prefetch = 0 : i64, scratch_operands = 0 : i64, tpu.core_type = #tpu.core_type<tc>, window_params = [{pipeline_mode = #tpu.pipeline_mode<synchronous>, transform_indices = @transform_0, window_bounds = array<i64: 9, 16, 16>}, {pipeline_mode = #tpu.pipeline_mode<synchronous>, transform_indices = @transform_1, window_bounds = array<i64: 9, 16, 1>}, {transform_indices = @transform_2, window_bounds = array<i64: 16, 128>}, {transform_indices = @transform_3, window_bounds = array<i64: 4, 128>}, {transform_indices = @transform_4, window_bounds = array<i64: 16, 128>}]} {
    %c0 = arith.constant 0 : index
    %c0_0 = arith.constant 0 : index
    %0 = vector.load %arg3[%c0, %c0_0] : memref<16x128xf32, #tpu.memory_space<vmem>>, vector<16x128xf32>
    %c0_1 = arith.constant 0 : index
    %c0_2 = arith.constant 0 : index
    %c0_3 = arith.constant 0 : index
    %1 = vector.load %arg1[%c0_1, %c0_2, %c0_3] : memref<9x16x16xf32, #tpu.memory_space<vmem>>, vector<1x16x16xf32>
    %2 = vector.shape_cast %1 : vector<1x16x16xf32> to vector<16x16xf32>
    %c0_4 = arith.constant 0 : index
    %c0_5 = arith.constant 0 : index
    %c0_6 = arith.constant 0 : index
    %3 = vector.load %arg2[%c0_4, %c0_5, %c0_6] : memref<9x16x1xf32, #tpu.memory_space<vmem>>, vector<1x16x1xf32>
    %4 = vector.shape_cast %3 : vector<1x16x1xf32> to vector<16x1xf32>
    %5 = vector.extract_strided_slice %2 {offsets = [0, 0], sizes = [16, 1], strides = [1, 1]} : vector<16x16xf32> to vector<16x1xf32>
    %6 = vector.extract_strided_slice %0 {offsets = [0, 0], sizes = [1, 128], strides = [1, 1]} : vector<16x128xf32> to vector<1x128xf32>
    %7 = vector.broadcast %5 : vector<16x1xf32> to vector<16x128xf32>
    %8 = vector.broadcast %6 : vector<1x128xf32> to vector<16x128xf32>
    %9 = arith.mulf %7, %8 : vector<16x128xf32>
    %10 = vector.extract_strided_slice %2 {offsets = [0, 1], sizes = [16, 1], strides = [1, 1]} : vector<16x16xf32> to vector<16x1xf32>
    %11 = vector.extract_strided_slice %0 {offsets = [1, 0], sizes = [1, 128], strides = [1, 1]} : vector<16x128xf32> to vector<1x128xf32>
    %12 = vector.broadcast %10 : vector<16x1xf32> to vector<16x128xf32>
    %13 = vector.broadcast %11 : vector<1x128xf32> to vector<16x128xf32>
    %14 = arith.mulf %12, %13 : vector<16x128xf32>
    %15 = arith.addf %9, %14 : vector<16x128xf32>
    %16 = vector.extract_strided_slice %2 {offsets = [0, 2], sizes = [16, 1], strides = [1, 1]} : vector<16x16xf32> to vector<16x1xf32>
    %17 = vector.extract_strided_slice %0 {offsets = [2, 0], sizes = [1, 128], strides = [1, 1]} : vector<16x128xf32> to vector<1x128xf32>
    %18 = vector.broadcast %16 : vector<16x1xf32> to vector<16x128xf32>
    %19 = vector.broadcast %17 : vector<1x128xf32> to vector<16x128xf32>
    %20 = arith.mulf %18, %19 : vector<16x128xf32>
    %21 = arith.addf %15, %20 : vector<16x128xf32>
    %22 = vector.extract_strided_slice %2 {offsets = [0, 3], sizes = [16, 1], strides = [1, 1]} : vector<16x16xf32> to vector<16x1xf32>
    %23 = vector.extract_strided_slice %0 {offsets = [3, 0], sizes = [1, 128], strides = [1, 1]} : vector<16x128xf32> to vector<1x128xf32>
    %24 = vector.broadcast %22 : vector<16x1xf32> to vector<16x128xf32>
    %25 = vector.broadcast %23 : vector<1x128xf32> to vector<16x128xf32>
    %26 = arith.mulf %24, %25 : vector<16x128xf32>
    %27 = arith.addf %21, %26 : vector<16x128xf32>
    %28 = vector.extract_strided_slice %2 {offsets = [0, 4], sizes = [16, 1], strides = [1, 1]} : vector<16x16xf32> to vector<16x1xf32>
    %29 = vector.extract_strided_slice %0 {offsets = [4, 0], sizes = [1, 128], strides = [1, 1]} : vector<16x128xf32> to vector<1x128xf32>
    %30 = vector.broadcast %28 : vector<16x1xf32> to vector<16x128xf32>
    %31 = vector.broadcast %29 : vector<1x128xf32> to vector<16x128xf32>
    %32 = arith.mulf %30, %31 : vector<16x128xf32>
    %33 = arith.addf %27, %32 : vector<16x128xf32>
    %34 = vector.extract_strided_slice %2 {offsets = [0, 5], sizes = [16, 1], strides = [1, 1]} : vector<16x16xf32> to vector<16x1xf32>
    %35 = vector.extract_strided_slice %0 {offsets = [5, 0], sizes = [1, 128], strides = [1, 1]} : vector<16x128xf32> to vector<1x128xf32>
    %36 = vector.broadcast %34 : vector<16x1xf32> to vector<16x128xf32>
    %37 = vector.broadcast %35 : vector<1x128xf32> to vector<16x128xf32>
    %38 = arith.mulf %36, %37 : vector<16x128xf32>
    %39 = arith.addf %33, %38 : vector<16x128xf32>
    %40 = vector.extract_strided_slice %2 {offsets = [0, 6], sizes = [16, 1], strides = [1, 1]} : vector<16x16xf32> to vector<16x1xf32>
    %41 = vector.extract_strided_slice %0 {offsets = [6, 0], sizes = [1, 128], strides = [1, 1]} : vector<16x128xf32> to vector<1x128xf32>
    %42 = vector.broadcast %40 : vector<16x1xf32> to vector<16x128xf32>
    %43 = vector.broadcast %41 : vector<1x128xf32> to vector<16x128xf32>
    %44 = arith.mulf %42, %43 : vector<16x128xf32>
    %45 = arith.addf %39, %44 : vector<16x128xf32>
    %46 = vector.extract_strided_slice %2 {offsets = [0, 7], sizes = [16, 1], strides = [1, 1]} : vector<16x16xf32> to vector<16x1xf32>
    %47 = vector.extract_strided_slice %0 {offsets = [7, 0], sizes = [1, 128], strides = [1, 1]} : vector<16x128xf32> to vector<1x128xf32>
    %48 = vector.broadcast %46 : vector<16x1xf32> to vector<16x128xf32>
    %49 = vector.broadcast %47 : vector<1x128xf32> to vector<16x128xf32>
    %50 = arith.mulf %48, %49 : vector<16x128xf32>
    %51 = arith.addf %45, %50 : vector<16x128xf32>
    %52 = vector.extract_strided_slice %2 {offsets = [0, 8], sizes = [16, 1], strides = [1, 1]} : vector<16x16xf32> to vector<16x1xf32>
    %53 = vector.extract_strided_slice %0 {offsets = [8, 0], sizes = [1, 128], strides = [1, 1]} : vector<16x128xf32> to vector<1x128xf32>
    %54 = vector.broadcast %52 : vector<16x1xf32> to vector<16x128xf32>
    %55 = vector.broadcast %53 : vector<1x128xf32> to vector<16x128xf32>
    %56 = arith.mulf %54, %55 : vector<16x128xf32>
    %57 = arith.addf %51, %56 : vector<16x128xf32>
    %58 = vector.extract_strided_slice %2 {offsets = [0, 9], sizes = [16, 1], strides = [1, 1]} : vector<16x16xf32> to vector<16x1xf32>
    %59 = vector.extract_strided_slice %0 {offsets = [9, 0], sizes = [1, 128], strides = [1, 1]} : vector<16x128xf32> to vector<1x128xf32>
    %60 = vector.broadcast %58 : vector<16x1xf32> to vector<16x128xf32>
    %61 = vector.broadcast %59 : vector<1x128xf32> to vector<16x128xf32>
    %62 = arith.mulf %60, %61 : vector<16x128xf32>
    %63 = arith.addf %57, %62 : vector<16x128xf32>
    %64 = vector.extract_strided_slice %2 {offsets = [0, 10], sizes = [16, 1], strides = [1, 1]} : vector<16x16xf32> to vector<16x1xf32>
    %65 = vector.extract_strided_slice %0 {offsets = [10, 0], sizes = [1, 128], strides = [1, 1]} : vector<16x128xf32> to vector<1x128xf32>
    %66 = vector.broadcast %64 : vector<16x1xf32> to vector<16x128xf32>
    %67 = vector.broadcast %65 : vector<1x128xf32> to vector<16x128xf32>
    %68 = arith.mulf %66, %67 : vector<16x128xf32>
    %69 = arith.addf %63, %68 : vector<16x128xf32>
    %70 = vector.extract_strided_slice %2 {offsets = [0, 11], sizes = [16, 1], strides = [1, 1]} : vector<16x16xf32> to vector<16x1xf32>
    %71 = vector.extract_strided_slice %0 {offsets = [11, 0], sizes = [1, 128], strides = [1, 1]} : vector<16x128xf32> to vector<1x128xf32>
    %72 = vector.broadcast %70 : vector<16x1xf32> to vector<16x128xf32>
    %73 = vector.broadcast %71 : vector<1x128xf32> to vector<16x128xf32>
    %74 = arith.mulf %72, %73 : vector<16x128xf32>
    %75 = arith.addf %69, %74 : vector<16x128xf32>
    %76 = vector.extract_strided_slice %2 {offsets = [0, 12], sizes = [16, 1], strides = [1, 1]} : vector<16x16xf32> to vector<16x1xf32>
    %77 = vector.extract_strided_slice %0 {offsets = [12, 0], sizes = [1, 128], strides = [1, 1]} : vector<16x128xf32> to vector<1x128xf32>
    %78 = vector.broadcast %76 : vector<16x1xf32> to vector<16x128xf32>
    %79 = vector.broadcast %77 : vector<1x128xf32> to vector<16x128xf32>
    %80 = arith.mulf %78, %79 : vector<16x128xf32>
    %81 = arith.addf %75, %80 : vector<16x128xf32>
    %82 = vector.extract_strided_slice %2 {offsets = [0, 13], sizes = [16, 1], strides = [1, 1]} : vector<16x16xf32> to vector<16x1xf32>
    %83 = vector.extract_strided_slice %0 {offsets = [13, 0], sizes = [1, 128], strides = [1, 1]} : vector<16x128xf32> to vector<1x128xf32>
    %84 = vector.broadcast %82 : vector<16x1xf32> to vector<16x128xf32>
    %85 = vector.broadcast %83 : vector<1x128xf32> to vector<16x128xf32>
    %86 = arith.mulf %84, %85 : vector<16x128xf32>
    %87 = arith.addf %81, %86 : vector<16x128xf32>
    %88 = vector.extract_strided_slice %2 {offsets = [0, 14], sizes = [16, 1], strides = [1, 1]} : vector<16x16xf32> to vector<16x1xf32>
    %89 = vector.extract_strided_slice %0 {offsets = [14, 0], sizes = [1, 128], strides = [1, 1]} : vector<16x128xf32> to vector<1x128xf32>
    %90 = vector.broadcast %88 : vector<16x1xf32> to vector<16x128xf32>
    %91 = vector.broadcast %89 : vector<1x128xf32> to vector<16x128xf32>
    %92 = arith.mulf %90, %91 : vector<16x128xf32>
    %93 = arith.addf %87, %92 : vector<16x128xf32>
    %94 = vector.extract_strided_slice %2 {offsets = [0, 15], sizes = [16, 1], strides = [1, 1]} : vector<16x16xf32> to vector<16x1xf32>
    %95 = vector.extract_strided_slice %0 {offsets = [15, 0], sizes = [1, 128], strides = [1, 1]} : vector<16x128xf32> to vector<1x128xf32>
    %96 = vector.broadcast %94 : vector<16x1xf32> to vector<16x128xf32>
    %97 = vector.broadcast %95 : vector<1x128xf32> to vector<16x128xf32>
    %98 = arith.mulf %96, %97 : vector<16x128xf32>
    %99 = arith.addf %93, %98 : vector<16x128xf32>
    %100 = vector.broadcast %4 : vector<16x1xf32> to vector<16x128xf32>
    %101 = arith.addf %99, %100 : vector<16x128xf32>
    %cst = arith.constant 0.000000e+00 : f32
    %102 = vector.broadcast %cst : f32 to vector<16x128xf32>
    %103 = arith.maximumf %101, %102 : vector<16x128xf32>
    %c1 = arith.constant 1 : index
    %c0_7 = arith.constant 0 : index
    %c0_8 = arith.constant 0 : index
    %104 = vector.load %arg1[%c1, %c0_7, %c0_8] : memref<9x16x16xf32, #tpu.memory_space<vmem>>, vector<1x16x16xf32>
    %105 = vector.shape_cast %104 : vector<1x16x16xf32> to vector<16x16xf32>
    %c1_9 = arith.constant 1 : index
    %c0_10 = arith.constant 0 : index
    %c0_11 = arith.constant 0 : index
    %106 = vector.load %arg2[%c1_9, %c0_10, %c0_11] : memref<9x16x1xf32, #tpu.memory_space<vmem>>, vector<1x16x1xf32>
    %107 = vector.shape_cast %106 : vector<1x16x1xf32> to vector<16x1xf32>
    %108 = vector.extract_strided_slice %105 {offsets = [0, 0], sizes = [16, 1], strides = [1, 1]} : vector<16x16xf32> to vector<16x1xf32>
    %109 = vector.extract_strided_slice %103 {offsets = [0, 0], sizes = [1, 128], strides = [1, 1]} : vector<16x128xf32> to vector<1x128xf32>
    %110 = vector.broadcast %108 : vector<16x1xf32> to vector<16x128xf32>
    %111 = vector.broadcast %109 : vector<1x128xf32> to vector<16x128xf32>
    %112 = arith.mulf %110, %111 : vector<16x128xf32>
    %113 = vector.extract_strided_slice %105 {offsets = [0, 1], sizes = [16, 1], strides = [1, 1]} : vector<16x16xf32> to vector<16x1xf32>
    %114 = vector.extract_strided_slice %103 {offsets = [1, 0], sizes = [1, 128], strides = [1, 1]} : vector<16x128xf32> to vector<1x128xf32>
    %115 = vector.broadcast %113 : vector<16x1xf32> to vector<16x128xf32>
    %116 = vector.broadcast %114 : vector<1x128xf32> to vector<16x128xf32>
    %117 = arith.mulf %115, %116 : vector<16x128xf32>
    %118 = arith.addf %112, %117 : vector<16x128xf32>
    %119 = vector.extract_strided_slice %105 {offsets = [0, 2], sizes = [16, 1], strides = [1, 1]} : vector<16x16xf32> to vector<16x1xf32>
    %120 = vector.extract_strided_slice %103 {offsets = [2, 0], sizes = [1, 128], strides = [1, 1]} : vector<16x128xf32> to vector<1x128xf32>
    %121 = vector.broadcast %119 : vector<16x1xf32> to vector<16x128xf32>
    %122 = vector.broadcast %120 : vector<1x128xf32> to vector<16x128xf32>
    %123 = arith.mulf %121, %122 : vector<16x128xf32>
    %124 = arith.addf %118, %123 : vector<16x128xf32>
    %125 = vector.extract_strided_slice %105 {offsets = [0, 3], sizes = [16, 1], strides = [1, 1]} : vector<16x16xf32> to vector<16x1xf32>
    %126 = vector.extract_strided_slice %103 {offsets = [3, 0], sizes = [1, 128], strides = [1, 1]} : vector<16x128xf32> to vector<1x128xf32>
    %127 = vector.broadcast %125 : vector<16x1xf32> to vector<16x128xf32>
    %128 = vector.broadcast %126 : vector<1x128xf32> to vector<16x128xf32>
    %129 = arith.mulf %127, %128 : vector<16x128xf32>
    %130 = arith.addf %124, %129 : vector<16x128xf32>
    %131 = vector.broadcast %107 : vector<16x1xf32> to vector<16x128xf32>
    %132 = arith.addf %130, %131 : vector<16x128xf32>
    %cst_12 = arith.constant 0.000000e+00 : f32
    %133 = vector.broadcast %cst_12 : f32 to vector<16x128xf32>
    %134 = arith.maximumf %132, %133 : vector<16x128xf32>
    %c2 = arith.constant 2 : index
    %c0_13 = arith.constant 0 : index
    %c0_14 = arith.constant 0 : index
    %135 = vector.load %arg1[%c2, %c0_13, %c0_14] : memref<9x16x16xf32, #tpu.memory_space<vmem>>, vector<1x16x16xf32>
    %136 = vector.shape_cast %135 : vector<1x16x16xf32> to vector<16x16xf32>
    %c2_15 = arith.constant 2 : index
    %c0_16 = arith.constant 0 : index
    %c0_17 = arith.constant 0 : index
    %137 = vector.load %arg2[%c2_15, %c0_16, %c0_17] : memref<9x16x1xf32, #tpu.memory_space<vmem>>, vector<1x16x1xf32>
    %138 = vector.shape_cast %137 : vector<1x16x1xf32> to vector<16x1xf32>
    %139 = vector.extract_strided_slice %136 {offsets = [0, 0], sizes = [16, 1], strides = [1, 1]} : vector<16x16xf32> to vector<16x1xf32>
    %140 = vector.extract_strided_slice %134 {offsets = [0, 0], sizes = [1, 128], strides = [1, 1]} : vector<16x128xf32> to vector<1x128xf32>
    %141 = vector.broadcast %139 : vector<16x1xf32> to vector<16x128xf32>
    %142 = vector.broadcast %140 : vector<1x128xf32> to vector<16x128xf32>
    %143 = arith.mulf %141, %142 : vector<16x128xf32>
    %144 = vector.extract_strided_slice %136 {offsets = [0, 1], sizes = [16, 1], strides = [1, 1]} : vector<16x16xf32> to vector<16x1xf32>
    %145 = vector.extract_strided_slice %134 {offsets = [1, 0], sizes = [1, 128], strides = [1, 1]} : vector<16x128xf32> to vector<1x128xf32>
    %146 = vector.broadcast %144 : vector<16x1xf32> to vector<16x128xf32>
    %147 = vector.broadcast %145 : vector<1x128xf32> to vector<16x128xf32>
    %148 = arith.mulf %146, %147 : vector<16x128xf32>
    %149 = arith.addf %143, %148 : vector<16x128xf32>
    %150 = vector.extract_strided_slice %136 {offsets = [0, 2], sizes = [16, 1], strides = [1, 1]} : vector<16x16xf32> to vector<16x1xf32>
    %151 = vector.extract_strided_slice %134 {offsets = [2, 0], sizes = [1, 128], strides = [1, 1]} : vector<16x128xf32> to vector<1x128xf32>
    %152 = vector.broadcast %150 : vector<16x1xf32> to vector<16x128xf32>
    %153 = vector.broadcast %151 : vector<1x128xf32> to vector<16x128xf32>
    %154 = arith.mulf %152, %153 : vector<16x128xf32>
    %155 = arith.addf %149, %154 : vector<16x128xf32>
    %156 = vector.extract_strided_slice %136 {offsets = [0, 3], sizes = [16, 1], strides = [1, 1]} : vector<16x16xf32> to vector<16x1xf32>
    %157 = vector.extract_strided_slice %134 {offsets = [3, 0], sizes = [1, 128], strides = [1, 1]} : vector<16x128xf32> to vector<1x128xf32>
    %158 = vector.broadcast %156 : vector<16x1xf32> to vector<16x128xf32>
    %159 = vector.broadcast %157 : vector<1x128xf32> to vector<16x128xf32>
    %160 = arith.mulf %158, %159 : vector<16x128xf32>
    %161 = arith.addf %155, %160 : vector<16x128xf32>
    %162 = vector.broadcast %138 : vector<16x1xf32> to vector<16x128xf32>
    %163 = arith.addf %161, %162 : vector<16x128xf32>
    %c3 = arith.constant 3 : index
    %c0_18 = arith.constant 0 : index
    %c0_19 = arith.constant 0 : index
    %164 = vector.load %arg1[%c3, %c0_18, %c0_19] : memref<9x16x16xf32, #tpu.memory_space<vmem>>, vector<1x16x16xf32>
    %165 = vector.shape_cast %164 : vector<1x16x16xf32> to vector<16x16xf32>
    %c3_20 = arith.constant 3 : index
    %c0_21 = arith.constant 0 : index
    %c0_22 = arith.constant 0 : index
    %166 = vector.load %arg2[%c3_20, %c0_21, %c0_22] : memref<9x16x1xf32, #tpu.memory_space<vmem>>, vector<1x16x1xf32>
    %167 = vector.shape_cast %166 : vector<1x16x1xf32> to vector<16x1xf32>
    %168 = vector.extract_strided_slice %165 {offsets = [0, 0], sizes = [16, 1], strides = [1, 1]} : vector<16x16xf32> to vector<16x1xf32>
    %169 = vector.extract_strided_slice %163 {offsets = [0, 0], sizes = [1, 128], strides = [1, 1]} : vector<16x128xf32> to vector<1x128xf32>
    %170 = vector.broadcast %168 : vector<16x1xf32> to vector<16x128xf32>
    %171 = vector.broadcast %169 : vector<1x128xf32> to vector<16x128xf32>
    %172 = arith.mulf %170, %171 : vector<16x128xf32>
    %173 = vector.extract_strided_slice %165 {offsets = [0, 1], sizes = [16, 1], strides = [1, 1]} : vector<16x16xf32> to vector<16x1xf32>
    %174 = vector.extract_strided_slice %163 {offsets = [1, 0], sizes = [1, 128], strides = [1, 1]} : vector<16x128xf32> to vector<1x128xf32>
    %175 = vector.broadcast %173 : vector<16x1xf32> to vector<16x128xf32>
    %176 = vector.broadcast %174 : vector<1x128xf32> to vector<16x128xf32>
    %177 = arith.mulf %175, %176 : vector<16x128xf32>
    %178 = arith.addf %172, %177 : vector<16x128xf32>
    %179 = vector.extract_strided_slice %165 {offsets = [0, 2], sizes = [16, 1], strides = [1, 1]} : vector<16x16xf32> to vector<16x1xf32>
    %180 = vector.extract_strided_slice %163 {offsets = [2, 0], sizes = [1, 128], strides = [1, 1]} : vector<16x128xf32> to vector<1x128xf32>
    %181 = vector.broadcast %179 : vector<16x1xf32> to vector<16x128xf32>
    %182 = vector.broadcast %180 : vector<1x128xf32> to vector<16x128xf32>
    %183 = arith.mulf %181, %182 : vector<16x128xf32>
    %184 = arith.addf %178, %183 : vector<16x128xf32>
    %185 = vector.extract_strided_slice %165 {offsets = [0, 3], sizes = [16, 1], strides = [1, 1]} : vector<16x16xf32> to vector<16x1xf32>
    %186 = vector.extract_strided_slice %163 {offsets = [3, 0], sizes = [1, 128], strides = [1, 1]} : vector<16x128xf32> to vector<1x128xf32>
    %187 = vector.broadcast %185 : vector<16x1xf32> to vector<16x128xf32>
    %188 = vector.broadcast %186 : vector<1x128xf32> to vector<16x128xf32>
    %189 = arith.mulf %187, %188 : vector<16x128xf32>
    %190 = arith.addf %184, %189 : vector<16x128xf32>
    %191 = vector.broadcast %167 : vector<16x1xf32> to vector<16x128xf32>
    %192 = arith.addf %190, %191 : vector<16x128xf32>
    %193 = arith.negf %192 : vector<16x128xf32>
    %194 = math.exp %193 : vector<16x128xf32>
    %cst_23 = arith.constant 1.000000e+00 : f32
    %195 = vector.broadcast %cst_23 : f32 to vector<16x128xf32>
    %196 = arith.addf %195, %194 : vector<16x128xf32>
    %197 = arith.divf %195, %196 : vector<16x128xf32>
    %c4 = arith.constant 4 : index
    %c0_24 = arith.constant 0 : index
    %c0_25 = arith.constant 0 : index
    %198 = vector.load %arg1[%c4, %c0_24, %c0_25] : memref<9x16x16xf32, #tpu.memory_space<vmem>>, vector<1x16x16xf32>
    %199 = vector.shape_cast %198 : vector<1x16x16xf32> to vector<16x16xf32>
    %c4_26 = arith.constant 4 : index
    %c0_27 = arith.constant 0 : index
    %c0_28 = arith.constant 0 : index
    %200 = vector.load %arg2[%c4_26, %c0_27, %c0_28] : memref<9x16x1xf32, #tpu.memory_space<vmem>>, vector<1x16x1xf32>
    %201 = vector.shape_cast %200 : vector<1x16x1xf32> to vector<16x1xf32>
    %202 = vector.extract_strided_slice %199 {offsets = [0, 0], sizes = [16, 1], strides = [1, 1]} : vector<16x16xf32> to vector<16x1xf32>
    %203 = vector.extract_strided_slice %163 {offsets = [0, 0], sizes = [1, 128], strides = [1, 1]} : vector<16x128xf32> to vector<1x128xf32>
    %204 = vector.broadcast %202 : vector<16x1xf32> to vector<16x128xf32>
    %205 = vector.broadcast %203 : vector<1x128xf32> to vector<16x128xf32>
    %206 = arith.mulf %204, %205 : vector<16x128xf32>
    %207 = vector.extract_strided_slice %199 {offsets = [0, 1], sizes = [16, 1], strides = [1, 1]} : vector<16x16xf32> to vector<16x1xf32>
    %208 = vector.extract_strided_slice %163 {offsets = [1, 0], sizes = [1, 128], strides = [1, 1]} : vector<16x128xf32> to vector<1x128xf32>
    %209 = vector.broadcast %207 : vector<16x1xf32> to vector<16x128xf32>
    %210 = vector.broadcast %208 : vector<1x128xf32> to vector<16x128xf32>
    %211 = arith.mulf %209, %210 : vector<16x128xf32>
    %212 = arith.addf %206, %211 : vector<16x128xf32>
    %213 = vector.extract_strided_slice %199 {offsets = [0, 2], sizes = [16, 1], strides = [1, 1]} : vector<16x16xf32> to vector<16x1xf32>
    %214 = vector.extract_strided_slice %163 {offsets = [2, 0], sizes = [1, 128], strides = [1, 1]} : vector<16x128xf32> to vector<1x128xf32>
    %215 = vector.broadcast %213 : vector<16x1xf32> to vector<16x128xf32>
    %216 = vector.broadcast %214 : vector<1x128xf32> to vector<16x128xf32>
    %217 = arith.mulf %215, %216 : vector<16x128xf32>
    %218 = arith.addf %212, %217 : vector<16x128xf32>
    %219 = vector.extract_strided_slice %199 {offsets = [0, 3], sizes = [16, 1], strides = [1, 1]} : vector<16x16xf32> to vector<16x1xf32>
    %220 = vector.extract_strided_slice %163 {offsets = [3, 0], sizes = [1, 128], strides = [1, 1]} : vector<16x128xf32> to vector<1x128xf32>
    %221 = vector.broadcast %219 : vector<16x1xf32> to vector<16x128xf32>
    %222 = vector.broadcast %220 : vector<1x128xf32> to vector<16x128xf32>
    %223 = arith.mulf %221, %222 : vector<16x128xf32>
    %224 = arith.addf %218, %223 : vector<16x128xf32>
    %225 = vector.broadcast %201 : vector<16x1xf32> to vector<16x128xf32>
    %226 = arith.addf %224, %225 : vector<16x128xf32>
    %227 = arith.negf %226 : vector<16x128xf32>
    %228 = math.exp %227 : vector<16x128xf32>
    %cst_29 = arith.constant 1.000000e+00 : f32
    %229 = vector.broadcast %cst_29 : f32 to vector<16x128xf32>
    %230 = arith.addf %229, %228 : vector<16x128xf32>
    %231 = arith.divf %229, %230 : vector<16x128xf32>
    %232 = vector.extract_strided_slice %231 {offsets = [0, 0], sizes = [4, 128], strides = [1, 1]} : vector<16x128xf32> to vector<4x128xf32>
    %233 = vector.extract_strided_slice %197 {offsets = [0, 0], sizes = [4, 128], strides = [1, 1]} : vector<16x128xf32> to vector<4x128xf32>
    %c0_30 = arith.constant 0 : index
    %c0_31 = arith.constant 0 : index
    %234 = vector.load %arg4[%c0_30, %c0_31] : memref<4x128xf32, #tpu.memory_space<vmem>>, vector<4x128xf32>
    %235 = arith.mulf %233, %234 : vector<4x128xf32>
    %236 = arith.addf %232, %235 : vector<4x128xf32>
    %c5 = arith.constant 5 : index
    %c0_32 = arith.constant 0 : index
    %c0_33 = arith.constant 0 : index
    %237 = vector.load %arg1[%c5, %c0_32, %c0_33] : memref<9x16x16xf32, #tpu.memory_space<vmem>>, vector<1x16x16xf32>
    %238 = vector.shape_cast %237 : vector<1x16x16xf32> to vector<16x16xf32>
    %c5_34 = arith.constant 5 : index
    %c0_35 = arith.constant 0 : index
    %c0_36 = arith.constant 0 : index
    %239 = vector.load %arg2[%c5_34, %c0_35, %c0_36] : memref<9x16x1xf32, #tpu.memory_space<vmem>>, vector<1x16x1xf32>
    %240 = vector.shape_cast %239 : vector<1x16x1xf32> to vector<16x1xf32>
    %241 = vector.extract_strided_slice %238 {offsets = [0, 0], sizes = [16, 1], strides = [1, 1]} : vector<16x16xf32> to vector<16x1xf32>
    %242 = vector.extract_strided_slice %236 {offsets = [0, 0], sizes = [1, 128], strides = [1, 1]} : vector<4x128xf32> to vector<1x128xf32>
    %243 = vector.broadcast %241 : vector<16x1xf32> to vector<16x128xf32>
    %244 = vector.broadcast %242 : vector<1x128xf32> to vector<16x128xf32>
    %245 = arith.mulf %243, %244 : vector<16x128xf32>
    %246 = vector.extract_strided_slice %238 {offsets = [0, 1], sizes = [16, 1], strides = [1, 1]} : vector<16x16xf32> to vector<16x1xf32>
    %247 = vector.extract_strided_slice %236 {offsets = [1, 0], sizes = [1, 128], strides = [1, 1]} : vector<4x128xf32> to vector<1x128xf32>
    %248 = vector.broadcast %246 : vector<16x1xf32> to vector<16x128xf32>
    %249 = vector.broadcast %247 : vector<1x128xf32> to vector<16x128xf32>
    %250 = arith.mulf %248, %249 : vector<16x128xf32>
    %251 = arith.addf %245, %250 : vector<16x128xf32>
    %252 = vector.extract_strided_slice %238 {offsets = [0, 2], sizes = [16, 1], strides = [1, 1]} : vector<16x16xf32> to vector<16x1xf32>
    %253 = vector.extract_strided_slice %236 {offsets = [2, 0], sizes = [1, 128], strides = [1, 1]} : vector<4x128xf32> to vector<1x128xf32>
    %254 = vector.broadcast %252 : vector<16x1xf32> to vector<16x128xf32>
    %255 = vector.broadcast %253 : vector<1x128xf32> to vector<16x128xf32>
    %256 = arith.mulf %254, %255 : vector<16x128xf32>
    %257 = arith.addf %251, %256 : vector<16x128xf32>
    %258 = vector.extract_strided_slice %238 {offsets = [0, 3], sizes = [16, 1], strides = [1, 1]} : vector<16x16xf32> to vector<16x1xf32>
    %259 = vector.extract_strided_slice %236 {offsets = [3, 0], sizes = [1, 128], strides = [1, 1]} : vector<4x128xf32> to vector<1x128xf32>
    %260 = vector.broadcast %258 : vector<16x1xf32> to vector<16x128xf32>
    %261 = vector.broadcast %259 : vector<1x128xf32> to vector<16x128xf32>
    %262 = arith.mulf %260, %261 : vector<16x128xf32>
    %263 = arith.addf %257, %262 : vector<16x128xf32>
    %264 = vector.broadcast %240 : vector<16x1xf32> to vector<16x128xf32>
    %265 = arith.addf %263, %264 : vector<16x128xf32>
    %cst_37 = arith.constant 0.000000e+00 : f32
    %266 = vector.broadcast %cst_37 : f32 to vector<16x128xf32>
    %267 = arith.maximumf %265, %266 : vector<16x128xf32>
    %c6 = arith.constant 6 : index
    %c0_38 = arith.constant 0 : index
    %c0_39 = arith.constant 0 : index
    %268 = vector.load %arg1[%c6, %c0_38, %c0_39] : memref<9x16x16xf32, #tpu.memory_space<vmem>>, vector<1x16x16xf32>
    %269 = vector.shape_cast %268 : vector<1x16x16xf32> to vector<16x16xf32>
    %c6_40 = arith.constant 6 : index
    %c0_41 = arith.constant 0 : index
    %c0_42 = arith.constant 0 : index
    %270 = vector.load %arg2[%c6_40, %c0_41, %c0_42] : memref<9x16x1xf32, #tpu.memory_space<vmem>>, vector<1x16x1xf32>
    %271 = vector.shape_cast %270 : vector<1x16x1xf32> to vector<16x1xf32>
    %272 = vector.extract_strided_slice %269 {offsets = [0, 0], sizes = [16, 1], strides = [1, 1]} : vector<16x16xf32> to vector<16x1xf32>
    %273 = vector.extract_strided_slice %267 {offsets = [0, 0], sizes = [1, 128], strides = [1, 1]} : vector<16x128xf32> to vector<1x128xf32>
    %274 = vector.broadcast %272 : vector<16x1xf32> to vector<16x128xf32>
    %275 = vector.broadcast %273 : vector<1x128xf32> to vector<16x128xf32>
    %276 = arith.mulf %274, %275 : vector<16x128xf32>
    %277 = vector.extract_strided_slice %269 {offsets = [0, 1], sizes = [16, 1], strides = [1, 1]} : vector<16x16xf32> to vector<16x1xf32>
    %278 = vector.extract_strided_slice %267 {offsets = [1, 0], sizes = [1, 128], strides = [1, 1]} : vector<16x128xf32> to vector<1x128xf32>
    %279 = vector.broadcast %277 : vector<16x1xf32> to vector<16x128xf32>
    %280 = vector.broadcast %278 : vector<1x128xf32> to vector<16x128xf32>
    %281 = arith.mulf %279, %280 : vector<16x128xf32>
    %282 = arith.addf %276, %281 : vector<16x128xf32>
    %283 = vector.extract_strided_slice %269 {offsets = [0, 2], sizes = [16, 1], strides = [1, 1]} : vector<16x16xf32> to vector<16x1xf32>
    %284 = vector.extract_strided_slice %267 {offsets = [2, 0], sizes = [1, 128], strides = [1, 1]} : vector<16x128xf32> to vector<1x128xf32>
    %285 = vector.broadcast %283 : vector<16x1xf32> to vector<16x128xf32>
    %286 = vector.broadcast %284 : vector<1x128xf32> to vector<16x128xf32>
    %287 = arith.mulf %285, %286 : vector<16x128xf32>
    %288 = arith.addf %282, %287 : vector<16x128xf32>
    %289 = vector.extract_strided_slice %269 {offsets = [0, 3], sizes = [16, 1], strides = [1, 1]} : vector<16x16xf32> to vector<16x1xf32>
    %290 = vector.extract_strided_slice %267 {offsets = [3, 0], sizes = [1, 128], strides = [1, 1]} : vector<16x128xf32> to vector<1x128xf32>
    %291 = vector.broadcast %289 : vector<16x1xf32> to vector<16x128xf32>
    %292 = vector.broadcast %290 : vector<1x128xf32> to vector<16x128xf32>
    %293 = arith.mulf %291, %292 : vector<16x128xf32>
    %294 = arith.addf %288, %293 : vector<16x128xf32>
    %295 = vector.broadcast %271 : vector<16x1xf32> to vector<16x128xf32>
    %296 = arith.addf %294, %295 : vector<16x128xf32>
    %cst_43 = arith.constant 0.000000e+00 : f32
    %297 = vector.broadcast %cst_43 : f32 to vector<16x128xf32>
    %298 = arith.maximumf %296, %297 : vector<16x128xf32>
    %c7 = arith.constant 7 : index
    %c0_44 = arith.constant 0 : index
    %c0_45 = arith.constant 0 : index
    %299 = vector.load %arg1[%c7, %c0_44, %c0_45] : memref<9x16x16xf32, #tpu.memory_space<vmem>>, vector<1x16x16xf32>
    %300 = vector.shape_cast %299 : vector<1x16x16xf32> to vector<16x16xf32>
    %c7_46 = arith.constant 7 : index
    %c0_47 = arith.constant 0 : index
    %c0_48 = arith.constant 0 : index
    %301 = vector.load %arg2[%c7_46, %c0_47, %c0_48] : memref<9x16x1xf32, #tpu.memory_space<vmem>>, vector<1x16x1xf32>
    %302 = vector.shape_cast %301 : vector<1x16x1xf32> to vector<16x1xf32>
    %303 = vector.extract_strided_slice %300 {offsets = [0, 0], sizes = [16, 1], strides = [1, 1]} : vector<16x16xf32> to vector<16x1xf32>
    %304 = vector.extract_strided_slice %298 {offsets = [0, 0], sizes = [1, 128], strides = [1, 1]} : vector<16x128xf32> to vector<1x128xf32>
    %305 = vector.broadcast %303 : vector<16x1xf32> to vector<16x128xf32>
    %306 = vector.broadcast %304 : vector<1x128xf32> to vector<16x128xf32>
    %307 = arith.mulf %305, %306 : vector<16x128xf32>
    %308 = vector.extract_strided_slice %300 {offsets = [0, 1], sizes = [16, 1], strides = [1, 1]} : vector<16x16xf32> to vector<16x1xf32>
    %309 = vector.extract_strided_slice %298 {offsets = [1, 0], sizes = [1, 128], strides = [1, 1]} : vector<16x128xf32> to vector<1x128xf32>
    %310 = vector.broadcast %308 : vector<16x1xf32> to vector<16x128xf32>
    %311 = vector.broadcast %309 : vector<1x128xf32> to vector<16x128xf32>
    %312 = arith.mulf %310, %311 : vector<16x128xf32>
    %313 = arith.addf %307, %312 : vector<16x128xf32>
    %314 = vector.extract_strided_slice %300 {offsets = [0, 2], sizes = [16, 1], strides = [1, 1]} : vector<16x16xf32> to vector<16x1xf32>
    %315 = vector.extract_strided_slice %298 {offsets = [2, 0], sizes = [1, 128], strides = [1, 1]} : vector<16x128xf32> to vector<1x128xf32>
    %316 = vector.broadcast %314 : vector<16x1xf32> to vector<16x128xf32>
    %317 = vector.broadcast %315 : vector<1x128xf32> to vector<16x128xf32>
    %318 = arith.mulf %316, %317 : vector<16x128xf32>
    %319 = arith.addf %313, %318 : vector<16x128xf32>
    %320 = vector.extract_strided_slice %300 {offsets = [0, 3], sizes = [16, 1], strides = [1, 1]} : vector<16x16xf32> to vector<16x1xf32>
    %321 = vector.extract_strided_slice %298 {offsets = [3, 0], sizes = [1, 128], strides = [1, 1]} : vector<16x128xf32> to vector<1x128xf32>
    %322 = vector.broadcast %320 : vector<16x1xf32> to vector<16x128xf32>
    %323 = vector.broadcast %321 : vector<1x128xf32> to vector<16x128xf32>
    %324 = arith.mulf %322, %323 : vector<16x128xf32>
    %325 = arith.addf %319, %324 : vector<16x128xf32>
    %326 = vector.broadcast %302 : vector<16x1xf32> to vector<16x128xf32>
    %327 = arith.addf %325, %326 : vector<16x128xf32>
    %cst_49 = arith.constant 0.000000e+00 : f32
    %328 = vector.broadcast %cst_49 : f32 to vector<16x128xf32>
    %329 = arith.maximumf %327, %328 : vector<16x128xf32>
    %c8 = arith.constant 8 : index
    %c0_50 = arith.constant 0 : index
    %c0_51 = arith.constant 0 : index
    %330 = vector.load %arg1[%c8, %c0_50, %c0_51] : memref<9x16x16xf32, #tpu.memory_space<vmem>>, vector<1x16x16xf32>
    %331 = vector.shape_cast %330 : vector<1x16x16xf32> to vector<16x16xf32>
    %c8_52 = arith.constant 8 : index
    %c0_53 = arith.constant 0 : index
    %c0_54 = arith.constant 0 : index
    %332 = vector.load %arg2[%c8_52, %c0_53, %c0_54] : memref<9x16x1xf32, #tpu.memory_space<vmem>>, vector<1x16x1xf32>
    %333 = vector.shape_cast %332 : vector<1x16x1xf32> to vector<16x1xf32>
    %334 = vector.extract_strided_slice %331 {offsets = [0, 0], sizes = [16, 1], strides = [1, 1]} : vector<16x16xf32> to vector<16x1xf32>
    %335 = vector.extract_strided_slice %329 {offsets = [0, 0], sizes = [1, 128], strides = [1, 1]} : vector<16x128xf32> to vector<1x128xf32>
    %336 = vector.broadcast %334 : vector<16x1xf32> to vector<16x128xf32>
    %337 = vector.broadcast %335 : vector<1x128xf32> to vector<16x128xf32>
    %338 = arith.mulf %336, %337 : vector<16x128xf32>
    %339 = vector.extract_strided_slice %331 {offsets = [0, 1], sizes = [16, 1], strides = [1, 1]} : vector<16x16xf32> to vector<16x1xf32>
    %340 = vector.extract_strided_slice %329 {offsets = [1, 0], sizes = [1, 128], strides = [1, 1]} : vector<16x128xf32> to vector<1x128xf32>
    %341 = vector.broadcast %339 : vector<16x1xf32> to vector<16x128xf32>
    %342 = vector.broadcast %340 : vector<1x128xf32> to vector<16x128xf32>
    %343 = arith.mulf %341, %342 : vector<16x128xf32>
    %344 = arith.addf %338, %343 : vector<16x128xf32>
    %345 = vector.extract_strided_slice %331 {offsets = [0, 2], sizes = [16, 1], strides = [1, 1]} : vector<16x16xf32> to vector<16x1xf32>
    %346 = vector.extract_strided_slice %329 {offsets = [2, 0], sizes = [1, 128], strides = [1, 1]} : vector<16x128xf32> to vector<1x128xf32>
    %347 = vector.broadcast %345 : vector<16x1xf32> to vector<16x128xf32>
    %348 = vector.broadcast %346 : vector<1x128xf32> to vector<16x128xf32>
    %349 = arith.mulf %347, %348 : vector<16x128xf32>
    %350 = arith.addf %344, %349 : vector<16x128xf32>
    %351 = vector.extract_strided_slice %331 {offsets = [0, 3], sizes = [16, 1], strides = [1, 1]} : vector<16x16xf32> to vector<16x1xf32>
    %352 = vector.extract_strided_slice %329 {offsets = [3, 0], sizes = [1, 128], strides = [1, 1]} : vector<16x128xf32> to vector<1x128xf32>
    %353 = vector.broadcast %351 : vector<16x1xf32> to vector<16x128xf32>
    %354 = vector.broadcast %352 : vector<1x128xf32> to vector<16x128xf32>
    %355 = arith.mulf %353, %354 : vector<16x128xf32>
    %356 = arith.addf %350, %355 : vector<16x128xf32>
    %357 = vector.broadcast %333 : vector<16x1xf32> to vector<16x128xf32>
    %358 = arith.addf %356, %357 : vector<16x128xf32>
    %c0_55 = arith.constant 0 : index
    %c0_56 = arith.constant 0 : index
    %359 = vector.load %arg5[%c0_55, %c0_56] : memref<16x128xf32, #tpu.memory_space<vmem>>, vector<16x128xf32>
    tpu.vector_store %arg5[%c0_55, %c0_56], %358 {strides = array<i32>} : memref<16x128xf32, #tpu.memory_space<vmem>>, vector<16x128xf32>,
    return
  }
  func.func @transform_0(%arg0: i32) -> (i32, i32, i32) {
    %c0_i32 = arith.constant 0 : i32
    %c0_i32_0 = arith.constant 0 : i32
    %c0_i32_1 = arith.constant 0 : i32
    %c0_i32_2 = arith.constant 0 : i32
    return %c0_i32, %c0_i32_0, %c0_i32_1 : i32, i32, i32
  }
  func.func @transform_1(%arg0: i32) -> (i32, i32, i32) {
    %c0_i32 = arith.constant 0 : i32
    %c0_i32_0 = arith.constant 0 : i32
    %c0_i32_1 = arith.constant 0 : i32
    %c0_i32_2 = arith.constant 0 : i32
    return %c0_i32, %c0_i32_0, %c0_i32_1 : i32, i32, i32
  }
  func.func @transform_2(%arg0: i32) -> (i32, i32) {
    %c0_i32 = arith.constant 0 : i32
    %c0_i32_0 = arith.constant 0 : i32
    return %c0_i32, %arg0 : i32, i32
  }
  func.func @transform_3(%arg0: i32) -> (i32, i32) {
    %c0_i32 = arith.constant 0 : i32
    %c0_i32_0 = arith.constant 0 : i32
    return %c0_i32, %arg0 : i32, i32
  }
  func.func @transform_4(%arg0: i32) -> (i32, i32) {
    %c0_i32 = arith.constant 0 : i32
    %c0_i32_0 = arith.constant 0 : i32
    return %c0_i32, %arg0 : i32, i32
  }
}

</mosaic_0001>

<bundles_post_ra>
// kernel: vae_forward.1
= control target key start
LH: loop header
LB: loop body
LE: loop exit
PB: predicated region body
PF: predicated region fallthrough
CT: control target
= control target key end

     0   :  { %9 = vsyncpa [#allocation3], 0  ;;  %s1605_s0 = inlined_call_operand.vmem [shape: f32[9,16,16], index: 0, kind: input, shape index: {}]   ;;  %s1606_s1 = inlined_call_operand.vmem [shape: f32[9,16,1], index: 1, kind: input, shape index: {}]   ;;  %s1607_s2 = inlined_call_operand.hbm [shape: f32[16,256], index: 2, kind: input, shape index: {}]   ;;  %s1608_s3 = inlined_call_operand.vmem [shape: f32[4,256], index: 3, kind: input, shape index: {}]   ;;  %s1609_s4 = inlined_call_operand.hbm [shape: f32[16,256], index: 4, kind: output, shape index: {}]  }
   0x1   :  { %11 = vsyncpa [#allocation3 + $0x1], 0 }
   0x2   :  { %12 = vsyncpa [#allocation4], 0 }
   0x3   :  { %14 = vsyncpa [#allocation4 + $0x1], 0  ;;  %s1247_s15 = smov 0   ;;  %s1249_s16 = smov 0  }
   0x4   :  { %s1251_s17 = smov 0   ;;  %s1253_s18 = smov 0  }
   0x5 LB: > { %s1268_s19 = sadd.s32 4294967295, %s1196_s18   ;;  %s938_s20 = sadd.s32 4294967294, %s1196_s18   ;;  %s1196_s18 = sphi %s1253_s18, %s1625_s18   ;;  %s1192_s17 = sphi %s1251_s17, %s1624_s17   ;;  %s1188_s16 = sphi %s1249_s16, %s1623_s16   ;;  %s1184_s15 = sphi %s1247_s15, %s1622_s15  }
   0x6   : > { %s1272_s21 = sadd.s32 1, %s1196_s18   ;;  %s69_s22 = sadd.s32 1, %s1192_s17 }
   0x7   : > { %s66_s23 = ssub.s32 %s1196_s18, %s1272_s21  ;;  %p76_p0 = scmp.ne.s32.totalorder %s1192_s17, %s1188_s16 }
   0x8   : > { %p67_p1 = scmp.eq.s32.totalorder %s66_s23, 0  ;;  %p77_p2 = scmp.eq.s32.totalorder %s1196_s18, 0 }
   0x9   : > { %p82_p3 = scmp.ne.s32.totalorder %s1188_s16, %s1184_s15  ;;  %p83_p4 = scmp.eq.s32.totalorder %s1268_s19, 0 }
   0xa   : > { %s1284_s24 = scalar_select %p67_p1, %s1192_s17, %s69_s22  }
   0xb   : > { %p1286_p5 = por %p77_p2, %p76_p0  ;;  %p1290_p6 = por %p83_p4, %p82_p3 }
   0xc   : > { %p132_p7 = scmp.eq.s32.totalorder %s1268_s19, 1  ;;  %p138_p8 = scmp.eq.s32.totalorder %s938_s20, 1 }
   0xd   : > { %s1613_s26 = scalar_select %p1290_p6, 1, 0 }
   0xe   : > { %p983_p10 = scmp.lt.s32.totalorder %s1196_s18, 2  ;;  %p1297_p11 = por %p132_p7, %p76_p0 }
   0xf   : > { %p1301_p12 = por %p138_p8, %p82_p3  ;;  %s164_s29 = sand.u32 1, %s1192_s17  }
  0x10   : > { %s1614_s27 = scalar_select %p1297_p11, 1, 0 }
  0x11   : > { %s1615_s28 = scalar_select %p1301_p12, 1, 0 }
  0x12   : > { %s942_s30 = sshll.u32 %s1196_s18, 7  ;;  %s941_s5 = sshll.u32 %s164_s29, 4 }
  0x13   : > { %s1310_s8 = scalar_lea.hbm %s1607_s2, %s942_s30  ;;  %s168_s9 = scalar_lea.vmem [#allocation2], %s941_s5 }
  0x14   : > { %s174_s10 = sshll.u32 %s168_s9, 4  ;;  %p1314_p13 = pnand %p983_p10, %p1286_p5  ;;  %s1318_s10 = int_to_ptr.vmem [resolvable:$true] %s174_s10 }
  0x15   : > { %s1321_s12 = scalar_lea.sflag [#allocation3], %s164_s29  ;;  %s1104_s13 = scalar_lea.hbm %s1310_s8, 256 }
  0x16   : > { %p1105_p1 = scmp.ne.s32.totalorder %s1310_s8, %s1104_s13  ;;  %p1106_p2 = pneg %p1314_p13 }
  0x17   : > { %s1109_s22 = scalar_lea.hbm %s1607_s2, 512  ;;  %p1110_p5 = scmp.lt.s32.totalorder %s1310_s8, %s1607_s2 }
  0x18   : > { %p1107_p3 = pnand %p1106_p2, %p1105_p1  ;;  %p1111_p7 = scmp.lt.s32.totalorder %s1109_s22, %s1104_s13 }
  0x1a   : > { %p1108_p4 = pneg %p1107_p3  ;;  %p1112_p8 = por %p1111_p7, %p1110_p5 }
  0x1c   : > { %p1113_p10 = pnand %p1112_p8, %p1108_p4 }
  0x1e   : > { %1116 = shalt.err (!%p1113_p10)
}
  0x1f   : > { %s1117_s29 = scalar_lea.vmem %s1318_s10, 256  ;;  %s1198_s30 = smov [#allocation2]  }
  0x20   : > { %p1118_p9 = scmp.ne.s32.totalorder %s1318_s10, %s1117_s29  ;;  %s1122_s5 = sshll.u32 %s1198_s30, 4  ;;  %s1123_s5 = int_to_ptr.vmem [resolvable:$false] %s1122_s5 }
  0x21   : > { %s1124_s6 = scalar_lea.vmem %s1123_s5, 512  ;;  %p1125_p3 = scmp.lt.s32.totalorder %s1318_s10, %s1123_s5 }
  0x22   : > { %p1120_p0 = pnand %p1118_p9, %p1106_p2  ;;  %p1126_p12 = scmp.lt.s32.totalorder %s1124_s6, %s1117_s29 }
  0x24   : > { %p1121_p1 = pneg %p1120_p0  ;;  %p1127_p11 = por %p1126_p12, %p1125_p3 }
  0x26   : > { %p1128_p6 = pnand %p1127_p11, %p1121_p1 }
  0x28   : > { %1131 = shalt.err (!%p1128_p6)
}
  0x29   : > { %s1199_s7 = smov 256   ;;  %s1200_s9 = smov 128  }
  0x2a   : > { %s1201_s13 = smov 8   ;;  %p189_p9 = scmp.lt.s32.totalorder %s1196_s18, 3 }
  0x2b   : > { %978 = dma.hbm_to_vmem [thread:$0]  (!%p1314_p13), %s1310_s8, 256, %s1318_s10, %s1321_s12, %s1199_s7, %s1200_s9, %s1201_s13  }
  0x2c   : > { %p1617_p0 = scmp.ge.s32.totalorder %s1196_s18, 1 }
  0x2e   : > { %p190_p2 = pnand %p1617_p0, %p189_p9 }
  0x2f   : > { %s1346_s14 = sand.u32 (!%p190_p2), 1, %s1188_s16   ;;  %p1618_p6 = scmp.ne.s32.totalorder (!%p190_p2), %s1613_s26, 0 }
  0x30   : > { %193 = sbr.rel (%p190_p2) target bundleno = 399 (0x18f), region = 36  ;;  %s944_s20 = sshll.u32 (!%p190_p2), %s1346_s14, 4 }
  0x31   : > { %s196_s22 = scalar_lea.sflag (!%p190_p2), [#allocation3], %s1346_s14  ;;  %s1352_s23 = scalar_lea.vmem (!%p190_p2), [#allocation2], %s944_s20 }
  0x35   : > { %1175 = dma.done.wait (%p1618_p6), %s196_s22, 256  }
  0x36   : > { %1177 = vsyncadd (%p1618_p6), %s196_s22, 4294967040  ;;  %v1202_v0 = vmov 2   ;;  %v1203_v1 = vmov 0   ;;  %v234_v2 = vld [vmem:[%s1605_s0] sm:$0xff]  ;;  %v1204_v3 = vmov 3   ;;  %v1205_v4 = vmov 1  }
  0x37   : > { %1041 = vset.pattern.permute.xlu1 %v1202_v0  ;;  %1039 = vset.pattern.permute.xlu0 %v1203_v1  ;;  %v1206_v5 = vmov 4   ;;  %v1207_v6 = vmov 5   ;;  %v1208_v7 = vmov 6   ;;  %v1209_v8 = vmov 8   ;;  %v947_v13 = vld [vmem:[%s1605_s0 + $0x10] sm:$0xff]  ;;  %v949_v17 = vld [vmem:[%s1605_s0 + $0x20] sm:$0xff] }
  0x38   : > { %257 = vperm.xlu1 %1041, %v234_v2   ;;  %238 = vperm.xlu0 %1039, %v234_v2   ;;  %v1210_v9 = vmov 7   ;;  %v1211_v10 = vmov 11   ;;  %v1212_v11 = vmov 9   ;;  %v1213_v12 = vmov 14   ;;  %v950_v18 = vld [vmem:[%s1606_s1 + $0x20] sm:$0xff]  ;;  %v951_v21 = vld [vmem:[%s1605_s0 + $0x30] sm:$0xff] }
  0x39   : > { %v1214_v14 = vmov 10   ;;  %v1215_v15 = vmov 12   ;;  %v1216_v16 = vmov 13   ;;  %v1217_v19 = vmov 15   ;;  %v235_v20 = vld [vmem:[%s1606_s1] sm:$0xff]  ;;  %v952_v22 = vld [vmem:[%s1606_s1 + $0x30] sm:$0xff] }
  0x3a   : > { %v948_v23 = vld [vmem:[%s1606_s1 + $0x10] sm:$0xff]  ;;  %v1412_v26 = vld [vmem:[%s1605_s0 + $0x60] sm:$0xff]  ;;  %v1430_v28 = vld [vmem:[%s1605_s0 + $0x88] sm:$0xff]  ;;  %v241_v32 = vlaneseq  ;;  %p228_p11 = scmp.lt.s32.totalorder %s1268_s19, 1  ;;  %s227_s26 = scalar_lea.vmem [#allocation5], %s944_s20 }
  0x3b   : > { %v1400_v24 = vld [vmem:[%s1605_s0 + $0x50] sm:$0xff]  ;;  %v954_v29 = vld [vmem:[%s1605_s0 + $0x40] sm:$0xff]  ;;  %s853_s11 = sshll.u32 %s227_s26, 4  ;;  %s968_s12 = sshll.u32 %s1268_s19, 7  ;;  %s1557_s11 = int_to_ptr.vmem [resolvable:$true] %s853_s11 }
  0x3c   : > { %1042 = vset.pattern.permute.xlu1 %v1204_v3  ;;  %1040 = vset.pattern.permute.xlu0 %v1205_v4  ;;  %v958_v25 = vld [vmem:[%s1606_s1 + $0x50] sm:$0xff]  ;;  %v1441_v30 = vld [vmem:[%s1605_s0 + $0x80] sm:$0xff]  ;;  %v1455_v33 = vshrl.u32 %v241_v32, 7  ;;  %s229_s9 = scalar_select %p228_p11, %s1268_s19, 1 }
  0x3d   : > { %267 = vperm.xlu1 %1042, %v234_v2   ;;  %247 = vperm.xlu0 %1040, %v234_v2   ;;  %v1420_v27 = vld [vmem:[%s1605_s0 + $0x70] sm:$0xff]  ;;  %v955_v31 = vld [vmem:[%s1606_s1 + $0x40] sm:$0xff]  ;;  %s1562_s20 = scalar_lea.hbm %s1609_s4, %s968_s12  ;;  %s841_s29 = scalar_lea.sflag [#allocation4], %s1346_s14 }
  0x3e   : > { %v1459_v34 = vsub.s32 0, %v1455_v33  ;;  %v1462_v35 = vsub.s32 1, %v1455_v33  ;;  %v232_v36 = vld [vmem:[%s1352_s23] sm:$0xff]  ;;  %v1467_v37 = vsub.s32 2, %v1455_v33  ;;  %v1472_v41 = vsub.s32 3, %v1455_v33  ;;  %s946_s13 = sshll.u32 %s229_s9, 2 }
  0x3f   : > { %v282_v43 = vsub.s32 4, %v1455_v33  ;;  %v292_v48 = vsub.s32 5, %v1455_v33  ;;  %v302_v55 = vsub.s32 6, %v1455_v33  ;;  %s231_s10 = scalar_lea.vmem %s1608_s3, %s946_s13  ;;  %s1132_s30 = scalar_lea.vmem %s1557_s11, 256 }
  0x40   : > { %v244_v40 = vrot.slane %v232_v36, %v1459_v34  ;;  %v253_v42 = vrot.slane %v232_v36, %v1462_v35  ;;  %v263_v44 = vrot.slane %v232_v36, %v1467_v37  ;;  %v273_v49 = vrot.slane %v232_v36, %v1472_v41  ;;  %p1133_p12 = scmp.ne.s32.totalorder %s1557_s11, %s1132_s30  ;;  %p1619_p13 = scmp.ne.s32.totalorder %s1614_s27, 0 }
  0x41   : > { %1043 = vset.pattern.permute.xlu1 %v1206_v5  ;;  %1044 = vset.pattern.permute.xlu0 %v1207_v6  ;;  %v283_v51 = vrot.slane %v232_v36, %v282_v43  ;;  %v293_v54 = vrot.slane %v232_v36, %v292_v48  ;;  %v303_v63 = vrot.slane %v232_v36, %v302_v55  ;;  %s1218_s19 = smov [#allocation5]  }
  0x42   : > { %277 = vperm.xlu1 %1043, %v234_v2   ;;  %287 = vperm.xlu0 %1044, %v234_v2   ;;  %p1134_p4 = pnand %p1133_p12, %p1619_p13  ;;  %s1136_s5 = sshll.u32 %s1218_s19, 4  ;;  %s1137_s5 = int_to_ptr.vmem [resolvable:$false] %s1136_s5 }
  0x43   : > { %s1138_s6 = scalar_lea.vmem %s1137_s5, 512  ;;  %p1139_p7 = scmp.lt.s32.totalorder %s1557_s11, %s1137_s5 }
  0x44   : > { %p1135_p5 = pneg %p1134_p4  ;;  %p1140_p8 = scmp.lt.s32.totalorder %s1138_s6, %s1132_s30 }
  0x46   : > { %1045 = vset.pattern.permute.xlu1 %v1208_v7  ;;  %1047 = vset.pattern.permute.xlu0 %v1209_v8  ;;  %v233_v7 = vld [vmem:[%s1352_s23 + $0x8] sm:$0xff]  ;;  %p1141_p10 = por %p1140_p8, %p1139_p7 }
  0x47   : > { %297 = vperm.xlu1 %1045, %v234_v2   ;;  %317 = vperm.xlu0 %1047, %v234_v2  }
  0x48   : > { %p1142_p1 = pnand %p1141_p10, %p1135_p5 }
  0x4b   : > { %1046 = vset.pattern.permute.xlu1 %v1210_v9  ;;  %1050 = vset.pattern.permute.xlu0 %v1211_v10 }
  0x4c   : > { %307 = vperm.xlu1 %1046, %v234_v2   ;;  %347 = vperm.xlu0 %1050, %v234_v2  }
  0x50   : > { %1048 = vset.pattern.permute.xlu1 %v1212_v11  ;;  %1053 = vset.pattern.permute.xlu0 %v1213_v12  ;;  %v323_v11 = vrot.slane %v233_v7, %v1459_v34 }
  0x51   : > { %327 = vperm.xlu1 %1048, %v234_v2   ;;  %377 = vperm.xlu0 %1053, %v234_v2  }
  0x55   : > { %1049 = vset.pattern.permute.xlu1 %v1214_v14  ;;  %1056 = vset.pattern.permute.xlu0 %v1203_v1 }
  0x56   : > { %337 = vperm.xlu1 %1049, %v234_v2   ;;  %409 = vperm.xlu0 %1056, %v947_v13  }
  0x5a   : > { %1051 = vset.pattern.permute.xlu1 %v1215_v15  ;;  %1059 = vset.pattern.permute.xlu0 %v1204_v3 }
  0x5b   : > { %357 = vperm.xlu1 %1051, %v234_v2   ;;  %438 = vperm.xlu0 %1059, %v947_v13  }
  0x5f   : > { %1052 = vset.pattern.permute.xlu1 %v1216_v16  ;;  %1061 = vset.pattern.permute.xlu0 %v1205_v4  ;;  %v960_v16 = vld [vmem:[%s1606_s1 + $0x60] sm:$0xff] }
  0x60   : > { %367 = vperm.xlu1 %1052, %v234_v2   ;;  %469 = vperm.xlu0 %1061, %v949_v17  }
  0x64   : > { %1054 = vset.pattern.permute.xlu1 %v1217_v19  ;;  %1064 = vset.pattern.permute.xlu0 %v1203_v1  ;;  %v333_v19 = vrot.slane %v233_v7, %v1462_v35 }
  0x65   : > { %387 = vperm.xlu1 %1054, %v234_v2   ;;  %500 = vperm.xlu0 %1064, %v950_v18   ;;  %v312_v2 = vsub.s32 7, %v1455_v33 }
  0x67   : > { %v313_v10 = vrot.slane %v232_v36, %v312_v2  ;;  %v363_v36 = vrot.slane %v233_v7, %v282_v43 }
  0x69   : > { %1055 = vset.pattern.permute.xlu1 %v1203_v1  ;;  %1067 = vset.pattern.permute.xlu0 %v1202_v0 }
  0x6a   : > { %398 = vperm.xlu1 %1055, %v235_v20   ;;  %529 = vperm.xlu0 %1067, %v951_v21  }
  0x6e   : > { %1057 = vset.pattern.permute.xlu1 %v1205_v4  ;;  %1070 = vset.pattern.permute.xlu0 %v1204_v3 }
  0x6f   : > { %418 = vperm.xlu1 %1057, %v947_v13   ;;  %539 = vperm.xlu0 %1070, %v951_v21  }
  0x73   : > { %1058 = vset.pattern.permute.xlu1 %v1202_v0  ;;  %1073 = vset.pattern.permute.xlu0 %v1203_v1 }
  0x74   : > { %428 = vperm.xlu1 %1058, %v947_v13   ;;  %550 = vperm.xlu0 %1073, %v952_v22  }
  0x78   : > { %1060 = vset.pattern.permute.xlu1 %v1203_v1  ;;  %1075 = vset.pattern.permute.xlu0 %v1205_v4 }
  0x79   : > { %449 = vperm.xlu1 %1060, %v948_v23   ;;  %618 = vperm.xlu0 %1075, %v1400_v24   ;;  %v343_v23 = vrot.slane %v233_v7, %v1467_v37 }
  0x7d   : > { %460 = vperm.xlu1 %1060, %v949_v17   ;;  %1078 = vset.pattern.permute.xlu0 %v1203_v1 }
  0x7e   : > { %649 = vperm.xlu0 %1078, %v958_v25  }
  0x81   : > { %1062 = vset.pattern.permute.xlu1 %v1202_v0 }
  0x82   : > { %479 = vperm.xlu1 %1062, %v949_v17   ;;  %1081 = vset.pattern.permute.xlu0 %v1202_v0 }
  0x83   : > { %679 = vperm.xlu0 %1081, %v1412_v26  }
  0x86   : > { %1063 = vset.pattern.permute.xlu1 %v1204_v3 }
  0x87   : > { %489 = vperm.xlu1 %1063, %v949_v17   ;;  %1086 = vset.pattern.permute.xlu0 %v1204_v3 }
  0x88   : > { %740 = vperm.xlu0 %1086, %v1420_v27  }
  0x8b   : > { %1065 = vset.pattern.permute.xlu1 %v1203_v1 }
  0x8c   : > { %510 = vperm.xlu1 %1065, %v951_v21   ;;  %1087 = vset.pattern.permute.xlu0 %v1203_v1 }
  0x8d   : > { %711 = vperm.xlu0 %1087, %v1420_v27  }
  0x90   : > { %1066 = vset.pattern.permute.xlu1 %v1205_v4 }
  0x91   : > { %519 = vperm.xlu1 %1066, %v951_v21   ;;  %769 = vperm.xlu0 %1087, %v1430_v28  }
  0x95   : > { %1068 = vset.pattern.permute.xlu1 %v1203_v1  ;;  %1090 = vset.pattern.permute.xlu0 %v1202_v0 }
  0x96   : > { %566 = vperm.xlu1 %1068, %v954_v29   ;;  %795 = vperm.xlu0 %1090, %v1441_v30  }
  0x9a   : > { %1069 = vset.pattern.permute.xlu1 %v1205_v4  ;;  %1093 = vset.pattern.permute.xlu0 %v1204_v3 }
  0x9b   : > { %571 = vperm.xlu1 %1069, %v954_v29   ;;  %815 = vperm.xlu0 %1093, %v1430_v28  }
  0x9f   : > { %1071 = vset.pattern.permute.xlu1 %v1202_v0  ;;  %1095 = vset.pattern.permute.xlu0 %v1203_v1 }
  0xa0   : > { %577 = vperm.xlu1 %1071, %v954_v29  }
  0xa4   : > { %1072 = vset.pattern.permute.xlu1 %v1204_v3 }
  0xa5   : > { %583 = vperm.xlu1 %1072, %v954_v29  }
  0xa9   : > { %1074 = vset.pattern.permute.xlu1 %v1203_v1 }
  0xaa   : > { %590 = vperm.xlu1 %1074, %v955_v31  }
  0xae   : > { %609 = vperm.xlu1 %1074, %v1400_v24  }
  0xb2   : > { %1076 = vset.pattern.permute.xlu1 %v1202_v0 }
  0xb3   : > { %v258_v38 = vpop.permute.xlu1 %257  ;;  %v239_v39 = vpop.permute.xlu0 %238  ;;  %628 = vperm.xlu1 %1076, %v1400_v24  }
  0xb4   : > { %v245_v45 = vmul.f32 %v244_v40, %v239_v39  ;;  %v264_v52 = vmul.f32 %v263_v44, %v258_v38  ;;  %v383_v44 = vrot.slane %v233_v7, %v302_v55 }
  0xb7   : > { %1077 = vset.pattern.permute.xlu1 %v1204_v3 }
  0xb8   : > { %v268_v46 = vpop.permute.xlu1 %267  ;;  %v248_v47 = vpop.permute.xlu0 %247  ;;  %638 = vperm.xlu1 %1077, %v1400_v24   ;;  %v353_v24 = vrot.slane %v233_v7, %v1472_v41 }
  0xb9   : > { %v254_v50 = vmul.f32 %v253_v42, %v248_v47  ;;  %v274_v56 = vmul.f32 %v273_v49, %v268_v46  ;;  %v373_v42 = vrot.slane %v233_v7, %v292_v48 }
  0xbb   : > { %v255_v53 = vadd.f32 %v254_v50, %v245_v45  ;;  %v962_v45 = vld [vmem:[%s1606_s1 + $0x70] sm:$0xff] }
  0xbc   : > { %1079 = vset.pattern.permute.xlu1 %v1203_v1 }
  0xbd   : > { %v265_v57 = vadd.f32 %v264_v52, %v255_v53  ;;  %v278_v58 = vpop.permute.xlu1 %277  ;;  %660 = vperm.xlu1 %1079, %v1412_v26   ;;  %v288_v59 = vpop.permute.xlu0 %287 }
  0xbe   : > { %v284_v60 = vmul.f32 %v283_v51, %v278_v58  ;;  %v294_v62 = vmul.f32 %v293_v54, %v288_v59  ;;  %v393_v51 = vrot.slane %v233_v7, %v312_v2 }
  0xbf   : > { %v275_v61 = vadd.f32 %v274_v56, %v265_v57 }
  0xc1   : > { %v285_v5 = vadd.f32 %v284_v60, %v275_v61  ;;  %1080 = vset.pattern.permute.xlu1 %v1205_v4 }
  0xc2   : > { %v298_v6 = vpop.permute.xlu1 %297  ;;  %669 = vperm.xlu1 %1080, %v1412_v26   ;;  %v318_v13 = vpop.permute.xlu0 %317 }
  0xc3   : > { %v295_v8 = vadd.f32 %v294_v62, %v285_v5  ;;  %v304_v9 = vmul.f32 %v303_v63, %v298_v6  ;;  %v324_v18 = vmul.f32 %v323_v11, %v318_v13 }
  0xc5   : > { %v305_v14 = vadd.f32 %v304_v9, %v295_v8 }
  0xc6   : > { %1082 = vset.pattern.permute.xlu1 %v1204_v3 }
  0xc7   : > { %v308_v12 = vpop.permute.xlu1 %307  ;;  %689 = vperm.xlu1 %1082, %v1412_v26   ;;  %v348_v26 = vpop.permute.xlu0 %347 }
  0xc8   : > { %v314_v15 = vmul.f32 %v313_v10, %v308_v12  ;;  %v354_v33 = vmul.f32 %v353_v24, %v348_v26 }
  0xca   : > { %v315_v17 = vadd.f32 %v314_v15, %v305_v14 }
  0xcb   : > { %1083 = vset.pattern.permute.xlu1 %v1203_v1 }
  0xcc   : > { %v328_v20 = vpop.permute.xlu1 %327  ;;  %700 = vperm.xlu1 %1083, %v960_v16   ;;  %v325_v21 = vadd.f32 %v324_v18, %v315_v17  ;;  %v378_v46 = vpop.permute.xlu0 %377 }
  0xcd   : > { %v334_v22 = vmul.f32 %v333_v19, %v328_v20  ;;  %v384_v50 = vmul.f32 %v383_v44, %v378_v46 }
  0xcf   : > { %v335_v29 = vadd.f32 %v334_v22, %v325_v21 }
  0xd0   : > { %1084 = vset.pattern.permute.xlu1 %v1205_v4 }
  0xd1   : > { %v338_v25 = vpop.permute.xlu1 %337  ;;  %720 = vperm.xlu1 %1084, %v1420_v27   ;;  %v410_v58 = vpop.permute.xlu0 %409 }
  0xd2   : > { %v344_v31 = vmul.f32 %v343_v23, %v338_v25 }
  0xd4   : > { %v345_v32 = vadd.f32 %v344_v31, %v335_v29 }
  0xd5   : > { %1085 = vset.pattern.permute.xlu1 %v1202_v0 }
  0xd6   : > { %v358_v38 = vpop.permute.xlu1 %357  ;;  %730 = vperm.xlu1 %1085, %v1420_v27   ;;  %v355_v39 = vadd.f32 %v354_v33, %v345_v32  ;;  %v439_v5 = vpop.permute.xlu0 %438 }
  0xd7   : > { %v364_v40 = vmul.f32 %v363_v36, %v358_v38 }
  0xd9   : > { %v365_v49 = vadd.f32 %v364_v40, %v355_v39 }
  0xda   : > { %1088 = vset.pattern.permute.xlu1 %v1203_v1 }
  0xdb   : > { %v368_v47 = vpop.permute.xlu1 %367  ;;  %751 = vperm.xlu1 %1088, %v962_v45   ;;  %v470_v15 = vpop.permute.xlu0 %469 }
  0xdc   : > { %v374_v43 = vmul.f32 %v373_v42, %v368_v47 }
  0xde   : > { %v375_v52 = vadd.f32 %v374_v43, %v365_v49 }
  0xdf   : > { %764 = vperm.xlu1 %1088, %v1441_v30  }
  0xe0   : > { %v385_v27 = vadd.f32 %v384_v50, %v375_v52  ;;  %v388_v53 = vpop.permute.xlu1 %387  ;;  %v501_v29 = vpop.permute.xlu0 %500 }
  0xe1   : > { %v394_v48 = vmul.f32 %v393_v51, %v388_v53 }
  0xe3   : > { %v395_v54 = vadd.f32 %v394_v48, %v385_v27  ;;  %1089 = vset.pattern.permute.xlu1 %v1205_v4 }
  0xe4   : > { %779 = vperm.xlu1 %1089, %v1441_v30  }
  0xe5   : > { %v399_v55 = vpop.permute.xlu1 %398  ;;  %v530_v36 = vpop.permute.xlu0 %529 }
  0xe6   : > { %v401_v56 = vadd.f32 %v399_v55, %v395_v54 }
  0xe8   : > { %v402_v57 = vmax.f32 %v401_v56, 0.0  ;;  %783 = vperm.xlu1 %1089, %v1430_v28  }
  0xea   : > { %v415_v59 = vrot.slane %v402_v57, %v1459_v34  ;;  %v419_v60 = vpop.permute.xlu1 %418  ;;  %v424_v61 = vrot.slane %v402_v57, %v1462_v35  ;;  %v444_v4 = vrot.slane %v402_v57, %v1472_v41  ;;  %v434_v2 = vrot.slane %v402_v57, %v1467_v37  ;;  %v540_v49 = vpop.permute.xlu0 %539 }
  0xec   : > { %v416_v62 = vmul.f32 %v415_v59, %v410_v58  ;;  %v425_v63 = vmul.f32 %v424_v61, %v419_v60  ;;  %1091 = vset.pattern.permute.xlu1 %v1202_v0  ;;  %v445_v9 = vmul.f32 %v444_v4, %v439_v5  ;;  %v965_v0 = vld [vmem:[%s1606_s1 + $0x80] sm:$0xff] }
  0xed   : > { %799 = vperm.xlu1 %1091, %v1430_v28  }
  0xee   : > { %v426_v7 = vadd.f32 %v425_v63, %v416_v62 }
  0xef   : > { %v429_v6 = vpop.permute.xlu1 %428  ;;  %v551_v53 = vpop.permute.xlu0 %550 }
  0xf0   : > { %v435_v8 = vmul.f32 %v434_v2, %v429_v6 }
  0xf1   : > { %1092 = vset.pattern.permute.xlu1 %v1204_v3  ;;  %v966_v3 = vld [vmem:[%s1606_s1 + $0x88] sm:$0xff] }
  0xf2   : > { %v436_v10 = vadd.f32 %v435_v8, %v426_v7  ;;  %811 = vperm.xlu1 %1092, %v1441_v30  }
  0xf4   : > { %v450_v11 = vpop.permute.xlu1 %449  ;;  %v446_v12 = vadd.f32 %v445_v9, %v436_v10 }
  0xf6   : > { %v452_v28 = vadd.f32 %v450_v11, %v446_v12  ;;  %1094 = vset.pattern.permute.xlu1 %v1203_v1 }
  0xf7   : > { %828 = vperm.xlu1 %1094, %v965_v0  }
  0xf8   : > { %v453_v13 = vmax.f32 %v452_v28, 0.0  ;;  %v461_v14 = vpop.permute.xlu1 %460 }
  0xfa   : > { %v466_v16 = vrot.slane %v453_v13, %v1459_v34  ;;  %v475_v30 = vrot.slane %v453_v13, %v1462_v35  ;;  %v485_v20 = vrot.slane %v453_v13, %v1467_v37  ;;  %v495_v22 = vrot.slane %v453_v13, %v1472_v41 }
  0xfb   : > { %833 = vperm.xlu1 %1094, %v966_v3   ;;  %v600_v3 = vld [vmem:[%s231_s10] sm:$0xf] }
  0xfc   : > { %v467_v17 = vmul.f32 %v466_v16, %v461_v14  ;;  %v476_v18 = vmul.f32 %v475_v30, %v470_v15 }
  0xfd   : > { %v480_v19 = vpop.permute.xlu1 %479 }
  0xfe   : > { %v477_v21 = vadd.f32 %v476_v18, %v467_v17  ;;  %v486_v1 = vmul.f32 %v485_v20, %v480_v19  ;;  %v619_v18 = vpop.permute.xlu0 %618 }
 0x100   : > { %v487_v24 = vadd.f32 %v486_v1, %v477_v21 }
 0x102   : > { %v490_v23 = vpop.permute.xlu1 %489 }
 0x103   : > { %v496_v25 = vmul.f32 %v495_v22, %v490_v23 }
 0x105   : > { %v497_v26 = vadd.f32 %v496_v25, %v487_v24 }
 0x107   : > { %v503_v31 = vadd.f32 %v501_v29, %v497_v26  ;;  %v511_v32 = vpop.permute.xlu1 %510 }
 0x109   : > { %v516_v33 = vrot.slane %v503_v31, %v1459_v34  ;;  %v525_v38 = vrot.slane %v503_v31, %v1462_v35  ;;  %v535_v39 = vrot.slane %v503_v31, %v1467_v37  ;;  %v545_v47 = vrot.slane %v503_v31, %v1472_v41 }
 0x10b   : > { %v517_v42 = vmul.f32 %v516_v33, %v511_v32  ;;  %v536_v46 = vmul.f32 %v535_v39, %v530_v36  ;;  %v546_v51 = vmul.f32 %v545_v47, %v540_v49  ;;  %v650_v32 = vpop.permute.xlu0 %649 }
 0x10c   : > { %v520_v40 = vpop.permute.xlu1 %519 }
 0x10d   : > { %v526_v44 = vmul.f32 %v525_v38, %v520_v40 }
 0x10f   : > { %v527_v45 = vadd.f32 %v526_v44, %v517_v42 }
 0x111   : > { %v567_v43 = vpop.permute.xlu1 %566  ;;  %v537_v50 = vadd.f32 %v536_v46, %v527_v45  ;;  %v680_v46 = vpop.permute.xlu0 %679 }
 0x112   : > { %v569_v56 = vmul.f32 %v567_v43, %v516_v33 }
 0x113   : > { %v547_v52 = vadd.f32 %v546_v51, %v537_v50 }
 0x115   : > { %v553_v48 = vadd.f32 %v551_v53, %v547_v52 }
 0x116   : > { %v572_v27 = vpop.permute.xlu1 %571 }
 0x117   : > { %v574_v54 = vmul.f32 %v572_v27, %v525_v38  ;;  %v953_v58 = vmul.f32 -1.442695, %v553_v48 }
 0x119   : > { %v575_v59 = vadd.f32 %v574_v54, %v569_v56  ;;  %1096 = vpow2.f32 %v953_v58  ;;  %v741_v54 = vpop.permute.xlu0 %740 }
 0x11b   : > { %v578_v55 = vpop.permute.xlu1 %577 }
 0x11c   : > { %v580_v57 = vmul.f32 %v578_v55, %v535_v39 }
 0x11e   : > { %v581_v61 = vadd.f32 %v580_v57, %v575_v59 }
 0x120   : > { %v584_v60 = vpop.permute.xlu1 %583 }
 0x121   : > { %v586_v62 = vmul.f32 %v584_v60, %v545_v47 }
 0x123   : > { %v587_v63 = vadd.f32 %v586_v62, %v581_v61  ;;  %v712_v61 = vpop.permute.xlu0 %711 }
 0x125   : > { %v591_v4 = vpop.permute.xlu1 %590 }
 0x126   : > { %v593_v2 = vadd.f32 %v591_v4, %v587_v63  ;;  %v1097_v8 = vpop.eup %1096 }
 0x127   : > { %v557_v9 = vadd.f32 1.0, %v1097_v8 }
 0x128   : > { %v956_v5 = vmul.f32 -1.442695, %v593_v2 }
 0x129   : > { %v610_v6 = vpop.permute.xlu1 %609 }
 0x12a   : > { %1098 = vpow2.f32 %v956_v5 }
 0x12b   : > { %1100 = vrcp.f32 %v557_v9 }
 0x12e   : > { %v629_v7 = vpop.permute.xlu1 %628 }
 0x133   : > { %v639_v10 = vpop.permute.xlu1 %638 }
 0x137   : > { %v1099_v11 = vpop.eup %1098 }
 0x138   : > { %v597_v12 = vadd.f32 1.0, %v1099_v11  ;;  %v661_v0 = vpop.permute.xlu1 %660  ;;  %v1101_v14 = vpop.eup %1100 }
 0x139   : > { %v601_v15 = vmul.f32 %v1101_v14, %v600_v3 }
 0x13a   : > { %1102 = vrcp.f32 %v597_v12 }
 0x13d   : > { %v670_v28 = vpop.permute.xlu1 %669 }
 0x142   : > { %v690_v13 = vpop.permute.xlu1 %689 }
 0x147   : > { %v1103_v16 = vpop.eup %1102  ;;  %v701_v30 = vpop.permute.xlu1 %700 }
 0x148   : > { %v602_v17 = vadd.f32 %v1103_v16, %v601_v15 }
 0x14a   : > { %v615_v19 = vrot.slane %v602_v17, %v1459_v34  ;;  %v634_v20 = vrot.slane %v602_v17, %v1467_v37  ;;  %v624_v21 = vrot.slane %v602_v17, %v1462_v35  ;;  %v644_v22 = vrot.slane %v602_v17, %v1472_v41 }
 0x14c   : > { %v616_v1 = vmul.f32 %v615_v19, %v610_v6  ;;  %v625_v23 = vmul.f32 %v624_v21, %v619_v18  ;;  %v721_v24 = vpop.permute.xlu1 %720  ;;  %v635_v25 = vmul.f32 %v634_v20, %v629_v7  ;;  %v645_v29 = vmul.f32 %v644_v22, %v639_v10  ;;  %v770_v10 = vpop.permute.xlu0 %769 }
 0x14e   : > { %v626_v26 = vadd.f32 %v625_v23, %v616_v1 }
 0x150   : > { %v636_v31 = vadd.f32 %v635_v25, %v626_v26 }
 0x151   : > { %v731_v33 = vpop.permute.xlu1 %730 }
 0x152   : > { %v646_v36 = vadd.f32 %v645_v29, %v636_v31 }
 0x154   : > { %v652_v38 = vadd.f32 %v650_v32, %v646_v36 }
 0x156   : > { %v653_v39 = vmax.f32 %v652_v38, 0.0  ;;  %v752_v40 = vpop.permute.xlu1 %751 }
 0x158   : > { %v666_v42 = vrot.slane %v653_v39, %v1459_v34  ;;  %v675_v44 = vrot.slane %v653_v39, %v1462_v35  ;;  %v685_v45 = vrot.slane %v653_v39, %v1467_v37  ;;  %v695_v43 = vrot.slane %v653_v39, %v1472_v41 }
 0x15a   : > { %v667_v47 = vmul.f32 %v666_v42, %v661_v0  ;;  %v676_v49 = vmul.f32 %v675_v44, %v670_v28  ;;  %v765_v50 = vpop.permute.xlu1 %764  ;;  %v686_v52 = vmul.f32 %v685_v45, %v680_v46  ;;  %v696_v53 = vmul.f32 %v695_v43, %v690_v13  ;;  %v796_v28 = vpop.permute.xlu0 %795 }
 0x15c   : > { %v677_v51 = vadd.f32 %v676_v49, %v667_v47 }
 0x15e   : > { %v687_v27 = vadd.f32 %v686_v52, %v677_v51  ;;  %v816_v21 = vpop.permute.xlu0 %815 }
 0x15f   : > { %v780_v55 = vpop.permute.xlu1 %779 }
 0x160   : > { %v697_v48 = vadd.f32 %v696_v53, %v687_v27 }
 0x162   : > { %v703_v56 = vadd.f32 %v701_v30, %v697_v48 }
 0x163   : > { %v784_v62 = vpop.permute.xlu1 %783 }
 0x164   : > { %v704_v57 = vmax.f32 %v703_v56, 0.0 }
 0x166   : > { %v717_v58 = vrot.slane %v704_v57, %v1459_v34  ;;  %v726_v59 = vrot.slane %v704_v57, %v1462_v35  ;;  %v736_v60 = vrot.slane %v704_v57, %v1467_v37  ;;  %v746_v63 = vrot.slane %v704_v57, %v1472_v41 }
 0x168   : > { %v718_v4 = vmul.f32 %v717_v58, %v712_v61  ;;  %v727_v2 = vmul.f32 %v726_v59, %v721_v24  ;;  %v737_v6 = vmul.f32 %v736_v60, %v731_v33  ;;  %v800_v7 = vpop.permute.xlu1 %799  ;;  %v747_v8 = vmul.f32 %v746_v63, %v741_v54 }
 0x16a   : > { %v728_v5 = vadd.f32 %v727_v2, %v718_v4 }
 0x16c   : > { %v738_v9 = vadd.f32 %v737_v6, %v728_v5 }
 0x16d   : > { %v812_v0 = vpop.permute.xlu1 %811 }
 0x16e   : > { %v748_v11 = vadd.f32 %v747_v8, %v738_v9 }
 0x170   : > { %v754_v12 = vadd.f32 %v752_v40, %v748_v11 }
 0x172   : > { %v755_v13 = vmax.f32 %v754_v12, 0.0  ;;  %v829_v20 = vpop.permute.xlu1 %828 }
 0x174   : > { %v789_v14 = vrot.slane %v755_v13, %v1462_v35  ;;  %v775_v3 = vrot.slane %v755_v13, %v1459_v34  ;;  %v805_v15 = vrot.slane %v755_v13, %v1467_v37  ;;  %v821_v16 = vrot.slane %v755_v13, %v1472_v41 }
 0x176   : > { %v790_v30 = vmul.f32 %v789_v14, %v780_v55  ;;  %v791_v17 = vmul.f32 %v789_v14, %v784_v62  ;;  %v776_v18 = vmul.f32 %v775_v3, %v765_v50  ;;  %v777_v19 = vmul.f32 %v775_v3, %v770_v10  ;;  %v834_v29 = vpop.permute.xlu1 %833 }
 0x177   : > { %v807_v22 = vmul.f32 %v805_v15, %v800_v7  ;;  %v806_v24 = vmul.f32 %v805_v15, %v796_v28  ;;  %v822_v35 = vmul.f32 %v821_v16, %v812_v0  ;;  %v823_v41 = vmul.f32 %v821_v16, %v816_v21 }
 0x178   : > { %v793_v1 = vadd.f32 %v791_v17, %v777_v19  ;;  %v792_v23 = vadd.f32 %v790_v30, %v776_v18 }
 0x17a   : > { %v809_v34 = vadd.f32 %v807_v22, %v793_v1  ;;  %v808_v37 = vadd.f32 %v806_v24, %v792_v23 }
 0x17c   : > { %v824_v25 = vadd.f32 %v822_v35, %v808_v37  ;;  %v825_v26 = vadd.f32 %v823_v41, %v809_v34 }
 0x17e   : > { %v836_v31 = vadd.f32 %v829_v20, %v824_v25  ;;  %v837_v32 = vadd.f32 %v834_v29, %v825_v26 }
 0x180   : > { %838 = vst [vmem:[%s227_s26] sm:$0xff] %v836_v31  ;;  %839 = vst [vmem:[%s227_s26 + $0x8] sm:$0xff] %v837_v32 }
 0x181   : > { %1145 = shalt.err (!%p1142_p1)
}
 0x182   : > { %s1146_s7 = scalar_lea.hbm %s1562_s20, 256  ;;  %s1150_s22 = scalar_lea.hbm %s1609_s4, 512 }
 0x183   : > { %p1147_p3 = scmp.ne.s32.totalorder %s1562_s20, %s1146_s7  ;;  %p1151_p2 = scmp.lt.s32.totalorder %s1562_s20, %s1609_s4 }
 0x184   : > { %p1152_p6 = scmp.lt.s32.totalorder %s1150_s22, %s1146_s7 }
 0x185   : > { %p1148_p9 = pnand %p1147_p3, %p1619_p13 }
 0x186   : > { %p1153_p11 = por %p1152_p6, %p1151_p2 }
 0x187   : > { %p1149_p0 = pneg %p1148_p9 }
 0x189   : > { %p1154_p12 = pnand %p1153_p11, %p1149_p0 }
 0x18b   : > { %1157 = shalt.err (!%p1154_p12)
}
 0x18c   : > { %s1219_s26 = smov 128   ;;  %s1220_s12 = smov 256  }
 0x18d   : > { %s1221_s25 = smov 8  }
 0x18e   : > { %973 = dma.vmem_to_hbm [thread:$0]  (%p1619_p13), %s1557_s11, 256, %s1562_s20, %s841_s29, %s1219_s26, %s1220_s12, %s1221_s25  }
 0x18f PF: > { %s868_s23 = sand.u32 1, %s1184_s15   ;;  %p1620_p4 = scmp.ne.s32.totalorder %s1615_s28, 0 }
 0x190   : > { %p1621_p5 = scmp.ge.s32.totalorder %s1196_s18, 2  ;;  %s869_s30 = scalar_lea.sflag [#allocation4], %s868_s23 }
 0x192   : > { %p980_p7 = pnand %p1621_p5, %p1620_p4 }
 0x194   : > { %p981_p8 = pneg %p980_p7 }
 0x196   : > { %1179 = dma.done.wait (%p981_p8), %s869_s30, 256  }
 0x197   : > { %1181 = vsyncadd (%p981_p8), %s869_s30, 4294967040  ;;  %p17_p10 = scmp.ge.s32.totalorder %s1272_s21, 4   ;;  %s1622_s15 = smov %s1188_s16 }
 0x198   : > { %s1623_s16 = smov %s1192_s17  ;;  %s1624_s17 = smov %s1284_s24 }
 0x199   : > { %s1625_s18 = smov %s1272_s21  ;;  %19 = sbr.rel (!%p17_p10) target bundleno = 5 (0x5), region = 100 }
 0x19e   :  { %874 = vsyncpa [#allocation3], 1 }
 0x19f   :  { %876 = vsyncpa [#allocation3 + $0x1], 1 }
 0x1a0   :  { %877 = vsyncpa [#allocation4], 1 }
 0x1a1   :  { %879 = vsyncpa [#allocation4 + $0x1], 1 }

</bundles_post_ra>
